<compile_context>
chip_gen: v6e
topology: v6e:2x2x1
jax: 0.10.0
libtpu: 0.0.40
codegen_flags: <defaults>
</compile_context>

<pallas_src>
import functools
from typing import NamedTuple

import jax
import jax.numpy as jnp
from jax.experimental import pallas as pl
from jax.experimental.pallas import tpu as pltpu

_LANE = 128
_MAX_TN = 1024               # output tile width (lane-dense; 10240/1024 = 10 even blocks)
_FALLBACK_VMEM = 64 << 20    # v7x per-TC VMEM; safe lower bound for every generation


def _round_up(x, m):
    return -(-x // m) * m


def _vmem_capacity_bytes():
    """Per-core VMEM capacity; conservative fallback if the query fails."""
    try:
        return int(pltpu.get_tpu_info().vmem_capacity_bytes)
    except Exception:
        return _FALLBACK_VMEM


class TilePlan(NamedTuple):
    N: int          # true feature size n*n
    tn: int         # output tile width
    tk: int         # reduction tile size
    k_steps: int    # number of reduction tiles
    n_blocks: int   # number of output tiles
    N_out: int      # padded output width  = n_blocks * tn
    K_pad: int      # padded reduction dim = k_steps * tk
    wt_dtype: str   # storage dtype of the weight stream
    vmem_limit: int


def make_plan(n, weight_dtype=jnp.float32, w_budget_bytes=None):
    """Generation-aware tile plan for the (1, n*n) x (n*n, n*n) GEMV."""
    N = n * n
    itemsize = jnp.dtype(weight_dtype).itemsize

    # Output (lane) padding: full width if small, else multiples of _MAX_TN.
    N_out = _round_up(N, _LANE)
    if N_out > _MAX_TN:
        N_out = _round_up(N, _MAX_TN)
        tn = _MAX_TN
    else:
        tn = N_out
    n_blocks = N_out // tn

    vmem_cap = _vmem_capacity_bytes()
    if w_budget_bytes is None:
        # Budget for the double-buffered weight stream; leave headroom for the
        # x / bias / output buffers and compiler scratch.
        w_budget_bytes = max(vmem_cap - (16 << 20), 8 << 20)

    # Smallest number of reduction steps whose double-buffered W tile fits.
    # K padding is decoupled from the output padding (streams fewer bytes).
    k_steps = 1
    while True:
        tk = _round_up(-(-N // k_steps), _LANE)
        if 2 * tk * tn * itemsize <= w_budget_bytes:
            break
        k_steps += 1
    K_pad = k_steps * tk

    vmem_need = 2 * tk * tn * itemsize + 2 * tk * 4 + 8 * tn * 4
    vmem_limit = int(min(max(vmem_need + (8 << 20), 32 << 20), vmem_cap - (2 << 20)))

    return TilePlan(N=N, tn=tn, tk=tk, k_steps=k_steps, n_blocks=n_blocks,
                    N_out=N_out, K_pad=K_pad,
                    wt_dtype=jnp.dtype(weight_dtype).name, vmem_limit=vmem_limit)


def prepare_params(W, b, plan):
    """Pad + pre-tile the Linear parameters once, off the hot path.

    W: (N, N) nn.Linear weight in (out, in) layout.  b: (N,) bias.
    Returns Wt_tiled (k_steps, n_blocks, tk, tn) -- each (tk, tn) block is a
    single contiguous DMA -- and b_pad (1, N_out) in f32.
    """
    N, tk, tn = plan.N, plan.tk, plan.tn
    dtype = jnp.dtype(plan.wt_dtype)
    Wt = jnp.zeros((plan.K_pad, plan.N_out), dtype)
    Wt = Wt.at[:N, :N].set(jnp.asarray(W, jnp.float32).T.astype(dtype))
    Wt_tiled = Wt.reshape(plan.k_steps, tk, plan.n_blocks, tn).transpose(0, 2, 1, 3)
    b_pad = jnp.zeros((1, plan.N_out), jnp.float32).at[0, :N].set(
        jnp.asarray(b, jnp.float32))
    return Wt_tiled, b_pad


def _linear_full_k_kernel(x_ref, wt_ref, b_ref, o_ref):
    """k_steps == 1: no reduction axis, no accumulator RMW, bias added once."""
    o_ref[...] = (jnp.dot(x_ref[...].astype(wt_ref.dtype), wt_ref[...],
                          preferred_element_type=jnp.float32)
                  + b_ref[...])


def _linear_tiled_k_kernel(x_ref, wt_ref, b_ref, o_ref):
    """k_steps > 1: accumulate into the resident output block over k."""
    k = pl.program_id(1)

    @pl.when(k == 0)
    def _():
        o_ref[...] = jnp.zeros_like(o_ref)

    o_ref[...] += jnp.dot(x_ref[...].astype(wt_ref.dtype), wt_ref[...],
                          preferred_element_type=jnp.float32)

    @pl.when(k == pl.num_programs(1) - 1)
    def _():
        o_ref[...] += b_ref[...]          # bias added exactly once


@functools.partial(jax.jit, static_argnames=("plan",))
def hungarian_forward(x, wt_tiled, b_pad, *, plan):
    """x: (n, n) f32; wt_tiled/b_pad from prepare_params(plan).
    Returns (n, n) f32 matching the PyTorch module: fc(x.view(1, n*n)).view(n, n)."""
    n = x.shape[0]
    N = n * n
    assert N == plan.N, "plan built for a different n"
    tk, tn, ks, nb = plan.tk, plan.tn, plan.k_steps, plan.n_blocks
    assert wt_tiled.shape == (ks, nb, tk, tn)
    assert b_pad.shape == (1, plan.N_out)

    # input.view(1, n*n), zero-padded and split into the reduction tiles.
    x_flat = jnp.zeros((plan.K_pad,), jnp.float32).at[:N].set(
        x.reshape(N).astype(jnp.float32))
    x_tiled = x_flat.reshape(ks, 1, tk)

    if ks == 1:
        # v5e/v6e path for the real module size: grid (n_blocks,), one
        # contiguous full-K weight block per output tile, no reduction axis.
        kernel = _linear_full_k_kernel
        grid = (nb,)
        x_spec = pl.BlockSpec((None, 1, tk), lambda j: (0, 0, 0))
        w_spec = pl.BlockSpec((None, None, tk, tn), lambda j: (0, j, 0, 0))
        b_spec = pl.BlockSpec((1, tn), lambda j: (0, j))
        o_spec = pl.BlockSpec((1, tn), lambda j: (0, j))
        dims = ("parallel",)
    else:
        # v7x path (64 MiB VMEM): tiled reduction, output axis outermost and
        # "parallel" so the even number of output blocks splits across both
        # TensorCores; k innermost and "arbitrary" (accumulator resident).
        kernel = _linear_tiled_k_kernel
        grid = (nb, ks)
        x_spec = pl.BlockSpec((None, 1, tk), lambda j, k: (k, 0, 0))
        w_spec = pl.BlockSpec((None, None, tk, tn), lambda j, k: (k, j, 0, 0))
        b_spec = pl.BlockSpec((1, tn), lambda j, k: (0, j))
        o_spec = pl.BlockSpec((1, tn), lambda j, k: (0, j))
        dims = ("parallel", "arbitrary")

    y = pl.pallas_call(
        kernel,
        out_shape=jax.ShapeDtypeStruct((1, plan.N_out), jnp.float32),
        grid_spec=pltpu.PrefetchScalarGridSpec(
            num_scalar_prefetch=0,
            grid=grid,
            in_specs=[x_spec, w_spec, b_spec],
            out_specs=o_spec,
        ),
        compiler_params=pltpu.CompilerParams(
            dimension_semantics=dims,
            vmem_limit_bytes=plan.vmem_limit,
        ),
    )(x_tiled, wt_tiled, b_pad)

    return y[0, :N].reshape(n, n)   # out.view(n, n); padded columns sliced off


if __name__ == "__main__":
    def _run_case(n, key, w_budget_bytes=None, weight_dtype=jnp.float32, tol=2e-4):
        N = n * n
        kx, kw, kb = jax.random.split(key, 3)

        # Deterministic init mimicking nn.Linear: U(-1/sqrt(in), 1/sqrt(in)).
        bound = 1.0 / jnp.sqrt(jnp.float32(N))
        W = jax.random.uniform(kw, (N, N), jnp.float32, -bound, bound)  # (out, in)
        b = jax.random.uniform(kb, (N,), jnp.float32, -bound, bound)
        x = jax.random.normal(kx, (n, n), jnp.float32)

        plan = make_plan(n, weight_dtype=weight_dtype, w_budget_bytes=w_budget_bytes)
        wt_tiled, b_pad = prepare_params(W, b, plan)
        out = jax.block_until_ready(hungarian_forward(x, wt_tiled, b_pad, plan=plan))

        # Reference: same math as PyTorch, x.view(1,N) @ W.T + b, reshaped.
        ref = (x.reshape(1, N) @ W.T + b).reshape(n, n)
        assert out.shape == (n, n)
        assert jnp.allclose(out, ref, atol=tol, rtol=tol), f"mismatch at n={n}"

    key = jax.random.PRNGKey(0)
    k1, k2, k3, k4 = jax.random.split(key, 4)
    # The real module uses n = 100 (N = 10000).  Keep the self-test small but
    # exercise every code path:
    _run_case(16, k1)                                 # single block, full-K
    _run_case(40, k2)                                 # multiple output blocks, full-K
    _run_case(40, k3, w_budget_bytes=3 << 20)         # forced tiled-K (v7x-style accumulator path)
    _run_case(16, k4, weight_dtype=jnp.bfloat16, tol=2e-2)  # optional bf16 weight stream
    print("KERNEL_OK")
</pallas_src>

<mosaic_0001>
module attributes {stable_mosaic.version = 11 : i64} {
  func.func @_linear_full_k_kernel(%arg0: i32, %arg1: memref<1x1x256xf32, #tpu.memory_space<vmem>>, %arg2: memref<1x1x256x256xf32, #tpu.memory_space<vmem>>, %arg3: memref<1x256xf32, #tpu.memory_space<vmem>>, %arg4: memref<1x256xf32, #tpu.memory_space<vmem>>) attributes {dimension_semantics = [#tpu.dimension_semantics<parallel>], iteration_bounds = array<i64: 1>, scalar_prefetch = 0 : i64, scratch_operands = 0 : i64, tpu.core_type = #tpu.core_type<tc>, window_params = [{pipeline_mode = #tpu.pipeline_mode<synchronous>, transform_indices = @transform_0, window_bounds = array<i64: 1, 1, 256>}, {transform_indices = @transform_1, window_bounds = array<i64: 1, 1, 256, 256>}, {transform_indices = @transform_2, window_bounds = array<i64: 1, 256>}, {transform_indices = @transform_3, window_bounds = array<i64: 1, 256>}]} {
    %c0 = arith.constant 0 : index
    %c0_0 = arith.constant 0 : index
    %c0_1 = arith.constant 0 : index
    %0 = vector.load %arg1[%c0, %c0_0, %c0_1] : memref<1x1x256xf32, #tpu.memory_space<vmem>>, vector<1x1x256xf32>
    %1 = vector.shape_cast %0 : vector<1x1x256xf32> to vector<1x256xf32>
    %c0_2 = arith.constant 0 : index
    %c0_3 = arith.constant 0 : index
    %c0_4 = arith.constant 0 : index
    %c0_5 = arith.constant 0 : index
    %2 = vector.load %arg2[%c0_2, %c0_3, %c0_4, %c0_5] : memref<1x1x256x256xf32, #tpu.memory_space<vmem>>, vector<1x1x256x256xf32>
    %3 = vector.shape_cast %2 : vector<1x1x256x256xf32> to vector<256x256xf32>
    %cst = arith.constant dense<0.000000e+00> : vector<1x256xf32>
    %4 = tpu.matmul %1, %3, %cst {dimension_numbers = #tpu.dot_dimension_numbers<[1], [0], [0], [1], [0, 0, 1, 1], [], []>} : vector<1x256xf32>, vector<256x256xf32>, vector<1x256xf32> -> vector<1x256xf32>
    %c0_6 = arith.constant 0 : index
    %c0_7 = arith.constant 0 : index
    %5 = vector.load %arg3[%c0_6, %c0_7] : memref<1x256xf32, #tpu.memory_space<vmem>>, vector<1x256xf32>
    %6 = arith.addf %4, %5 : vector<1x256xf32>
    %c0_8 = arith.constant 0 : index
    %c0_9 = arith.constant 0 : index
    %7 = vector.load %arg4[%c0_8, %c0_9] : memref<1x256xf32, #tpu.memory_space<vmem>>, vector<1x256xf32>
    tpu.vector_store %arg4[%c0_8, %c0_9], %6 {strides = array<i32>} : memref<1x256xf32, #tpu.memory_space<vmem>>, vector<1x256xf32>,
    return
  }
  func.func @transform_0(%arg0: i32) -> (i32, i32, i32) {
    %c0_i32 = arith.constant 0 : i32
    %c0_i32_0 = arith.constant 0 : i32
    %c0_i32_1 = arith.constant 0 : i32
    %c0_i32_2 = arith.constant 0 : i32
    return %c0_i32, %c0_i32_0, %c0_i32_1 : i32, i32, i32
  }
  func.func @transform_1(%arg0: i32) -> (i32, i32, i32, i32) {
    %c0_i32 = arith.constant 0 : i32
    %c0_i32_0 = arith.constant 0 : i32
    %c0_i32_1 = arith.constant 0 : i32
    %c0_i32_2 = arith.constant 0 : i32
    return %c0_i32, %arg0, %c0_i32_0, %c0_i32_1 : i32, i32, i32, i32
  }
  func.func @transform_2(%arg0: i32) -> (i32, i32) {
    %c0_i32 = arith.constant 0 : i32
    %c0_i32_0 = arith.constant 0 : i32
    return %c0_i32, %arg0 : i32, i32
  }
  func.func @transform_3(%arg0: i32) -> (i32, i32) {
    %c0_i32 = arith.constant 0 : i32
    %c0_i32_0 = arith.constant 0 : i32
    return %c0_i32, %arg0 : i32, i32
  }
}

</mosaic_0001>

<bundles_post_ra>
// kernel: squeeze.1
= control target key start
LH: loop header
LB: loop body
LE: loop exit
PB: predicated region body
PF: predicated region fallthrough
CT: control target
= control target key end

     0   :  { %s125_s0 = inlined_call_operand.vmem [shape: f32[256], index: 0, kind: input, shape index: {}]   ;;  %s126_s1 = inlined_call_operand.hbm [shape: f32[16,16], index: 1, kind: output, shape index: {}]  }
   0x1   :  { %v6_v0 = vld [vmem:[%s125_s0] sm:$0x3] }
   0x2   :  { %7 = vst [vmem:[#allocation2] sm:$0x3] %v6_v0 }
   0x3   :  { %2 = vsyncpa [#allocation1], 0  ;;  %s93_s0 = smov 112   ;;  %s94_s8 = smov 80   ;;  %vm9_vm0 = vcmask 130048  }
   0x4   :  { %s95_s9 = smov 96   ;;  %s96_s10 = smov 64  }
   0x5   :  { %s97_s11 = smov 48   ;;  %s98_s12 = smov 32  }
   0x6   :  { %s99_s13 = smov 16   ;;  %s100_s14 = smov [#allocation0]  }
   0x7   :  { %s57_s15 = sshll.u32 %s100_s14, 4  ;;  %s58_s15 = int_to_ptr.vmem [resolvable:$true] %s57_s15 }
   0x8   :  { %s71_s16 = scalar_lea.vmem %s58_s15, 256  ;;  %p76_p1 = scmp.lt.s32.totalorder %s58_s15, %s58_s15 }
   0x9   :  { %v11_v1 = vld [vmem:[#allocation2] sm:$0x3]   ;;  %p72_p0 = scmp.ne.s32.totalorder %s58_s15, %s71_s16  ;;  %p77_p2 = scmp.lt.s32.totalorder %s71_s16, %s71_s16 }
   0xa   :  { %v23_v2 = vld [vmem:[#allocation2] sm:$0x3]   ;;  %12 = vrot.lane.b32.xlu0 %v11_v1, %s93_s0 }
   0xb   :  { %24 = vrot.lane.b32.xlu1 %v23_v2, %s94_s8  ;;  %v17_v3 = vld [vmem:[#allocation2] sm:$0x3]   ;;  %p78_p3 = por %p77_p2, %p76_p1 }
   0xc   :  { %v29_v4 = vld [vmem:[#allocation2] sm:$0x3]  }
   0xd   :  { %v8_v5 = vld [vmem:[#allocation2] sm:$0x3]   ;;  %p79_p4 = pnand %p78_p3, %p72_p0 }
   0xe   :  { %10 = vst.msk [vmem:[#allocation0] ss:$8 sm:$0x3] %vm9_vm0, %v8_v5   ;;  %18 = vrot.lane.b32.xlu0 %v17_v3, %s95_s9  ;;  %v35_v6 = vld [vmem:[#allocation2] sm:$0x3]  }
   0xf   :  { %30 = vrot.lane.b32.xlu1 %v29_v4, %s96_s10  ;;  %v41_v7 = vld [vmem:[#allocation2] sm:$0x3]  }
  0x10   :  { %v47_v8 = vld [vmem:[#allocation2] sm:$0x3]  }
  0x12   :  { %36 = vrot.lane.b32.xlu0 %v35_v6, %s97_s11 }
  0x13   :  { %42 = vrot.lane.b32.xlu1 %v41_v7, %s98_s12 }
  0x16   :  { %48 = vrot.lane.b32.xlu0 %v47_v8, %s99_s13 }
  0x7c   :  { %v13_v9 = vpop.permute.xlu0 %12  }
  0x7d   :  { %v25_v10 = vpop.permute.xlu1 %24   ;;  %16 = vst.msk [vmem:[#allocation0 + $0x1] ss:$8 sm:$0x3] %vm9_vm0, %v13_v9  }
  0x7e   :  { %28 = vst.msk [vmem:[#allocation0 + $0x3] ss:$8 sm:$0x3] %vm9_vm0, %v25_v10  }
  0x80   :  { %v19_v11 = vpop.permute.xlu0 %18  }
  0x81   :  { %v31_v12 = vpop.permute.xlu1 %30   ;;  %22 = vst.msk [vmem:[#allocation0 + $0x2] ss:$8 sm:$0x3] %vm9_vm0, %v19_v11  }
  0x82   :  { %34 = vst.msk [vmem:[#allocation0 + $0x4] ss:$8 sm:$0x3] %vm9_vm0, %v31_v12  }
  0x84   :  { %v37_v13 = vpop.permute.xlu0 %36  }
  0x85   :  { %v43_v14 = vpop.permute.xlu1 %42   ;;  %40 = vst.msk [vmem:[#allocation0 + $0x5] ss:$8 sm:$0x3] %vm9_vm0, %v37_v13  }
  0x86   :  { %46 = vst.msk [vmem:[#allocation0 + $0x6] ss:$8 sm:$0x3] %vm9_vm0, %v43_v14  }
  0x88   :  { %v49_v15 = vpop.permute.xlu0 %48  }
  0x89   :  { %52 = vst.msk [vmem:[#allocation0 + $0x7] ss:$8 sm:$0x3] %vm9_vm0, %v49_v15  }
  0x8a   :  { %82 = shalt.err (!%p79_p4)
}
  0x8b   :  { %60 = dma.vmem_to_hbm [thread:$0]  %s58_s15, 256, %s126_s1, [#allocation1]  }
  0x8c   :  { %91 = dma.done.wait [#allocation1], 256  }
  0x8d   :  { %92 = vsyncadd [#allocation1], 4294967040 }
  0x8e   :  { %62 = vsyncpa [#allocation1], 1 }

// kernel: hungarian_forward.1
= control target key start
LH: loop header
LB: loop body
LE: loop exit
PB: predicated region body
PF: predicated region fallthrough
CT: control target
= control target key end

     0   :  { %8 = vsyncpa [#allocation3], 0  ;;  %s241_s12 = smov [#allocation2]   ;;  %s292_s0 = inlined_call_operand.vmem [shape: f32[1,1,256], index: 0, kind: input, shape index: {}]   ;;  %s293_s1 = inlined_call_operand.hbm [shape: f32[1,1,256,256], index: 1, kind: input, shape index: {}]   ;;  %s294_s2 = inlined_call_operand.vmem [shape: f32[1,256], index: 2, kind: input, shape index: {}]   ;;  %s295_s3 = inlined_call_operand.vmem [shape: f32[1,256], index: 3, kind: output, shape index: {}]  }
   0x1   :  { %s16_s13 = sshll.u32 %s241_s12, 4  ;;  %s17_s13 = int_to_ptr.vmem [resolvable:$true] %s16_s13 }
   0x2   :  { %s227_s14 = scalar_lea.vmem %s17_s13, 8192  ;;  %p232_p1 = scmp.lt.s32.totalorder %s17_s13, %s17_s13 }
   0x3   :  { %p228_p0 = scmp.ne.s32.totalorder %s17_s13, %s227_s14  ;;  %p233_p2 = scmp.lt.s32.totalorder %s227_s14, %s227_s14 }
   0x5   :  { %p234_p3 = por %p233_p2, %p232_p1 }
   0x7   :  { %p235_p4 = pnand %p234_p3, %p228_p0 }
   0x9   :  { %238 = shalt.err (!%p235_p4)
}
   0xa   :  { %s242_s15 = smov 256   ;;  %s243_s16 = smov 16  }
   0xb   :  { %22 = dma.hbm_to_vmem [thread:$0]  %s293_s1, 8192, %s17_s13, [#allocation3], %s242_s15, %s242_s15, %s243_s16  }
   0xc   :  { %239 = dma.done.wait [#allocation3], 8192  }
   0xd   :  { %240 = vsyncadd [#allocation3], 4294959104  ;;  %v60_v0 = vld [vmem:[#allocation2 + $0xf8] sm:$0xff]  ;;  %v59_v1 = vld [vmem:[#allocation2 + $0xf0] sm:$0xff]  ;;  %v95_v13 = vlaneseq }
   0xe   :  { %v58_v2 = vld [vmem:[#allocation2 + $0xe8] sm:$0xff]  ;;  %116 = vmatprep.subr.mxu0 %v60_v0  ;;  %v57_v3 = vld [vmem:[#allocation2 + $0xe0] sm:$0xff]  ;;  %v56_v4 = vld [vmem:[#allocation2 + $0xd8] sm:$0xff] }
   0xf   :  { %117 = vmatpush1.msra.mxu0 %v59_v1  ;;  %v55_v5 = vld [vmem:[#allocation2 + $0xd0] sm:$0xff]  ;;  %v54_v6 = vld [vmem:[#allocation2 + $0xc8] sm:$0xff]  ;;  %v53_v7 = vld [vmem:[#allocation2 + $0xc0] sm:$0xff]  ;;  %v269_v18 = vshrl.u32 %v95_v13, 7  ;;  %vm207_vm0 = vcmp.lt.s32.totalorder %v95_v13, 256 }
  0x10   :  { %118 = vmatprep.subr.mxu0 %v58_v2  ;;  %v52_v8 = vld [vmem:[#allocation2 + $0xb8] sm:$0xff]  ;;  %v51_v9 = vld [vmem:[#allocation2 + $0xb0] sm:$0xff]  ;;  %v50_v10 = vld [vmem:[#allocation2 + $0xa8] sm:$0xff] }
  0x11   :  { %119 = vmatpush1.msra.mxu0 %v57_v3  ;;  %v49_v11 = vld [vmem:[#allocation2 + $0xa0] sm:$0xff]  ;;  %v48_v12 = vld [vmem:[#allocation2 + $0x98] sm:$0xff]  ;;  %v47_v14 = vld [vmem:[#allocation2 + $0x90] sm:$0xff]  ;;  %v101_v23 = vsub.s32 1, %v269_v18  ;;  %v97_v1 = vsub.s32 0, %v269_v18 }
  0x12   :  { %120 = vmatprep.subr.mxu0 %v56_v4  ;;  %v46_v15 = vld [vmem:[#allocation2 + $0x88] sm:$0xff]  ;;  %v45_v16 = vld [vmem:[#allocation2 + $0x80] sm:$0xff]  ;;  %v44_v17 = vld [vmem:[#allocation2 + $0x78] sm:$0xff] }
  0x13   :  { %121 = vmatpush1.msra.mxu0 %v55_v5  ;;  %v43_v19 = vld [vmem:[#allocation2 + $0x70] sm:$0xff]  ;;  %v42_v20 = vld [vmem:[#allocation2 + $0x68] sm:$0xff]  ;;  %v41_v21 = vld [vmem:[#allocation2 + $0x60] sm:$0xff] }
  0x14   :  { %122 = vmatprep.subr.mxu0 %v54_v6  ;;  %v40_v22 = vld [vmem:[#allocation2 + $0x58] sm:$0xff]  ;;  %v39_v24 = vld [vmem:[#allocation2 + $0x50] sm:$0xff]  ;;  %v38_v25 = vld [vmem:[#allocation2 + $0x48] sm:$0xff] }
  0x15   :  { %123 = vmatpush1.msra.mxu0 %v53_v7  ;;  %v37_v26 = vld [vmem:[#allocation2 + $0x40] sm:$0xff]  ;;  %v36_v28 = vld [vmem:[#allocation2 + $0x38] sm:$0xff]  ;;  %v35_v30 = vld [vmem:[#allocation2 + $0x30] sm:$0xff]  ;;  %v244_v7 = vmov 1966171168  }
  0x16   :  { %124 = vmatprep.subr.mxu0 %v52_v8  ;;  %v275_v27 = vld [vmem:[%s292_s0] sm:$0x3]  ;;  %v34_v31 = vld [vmem:[#allocation2 + $0x28] sm:$0xff]  ;;  %v32_v33 = vld [vmem:[#allocation2 + $0x18] sm:$0xff]  ;;  %v191_v8 = vunpack.c.l.s4 %v244_v7 }
  0x17   :  { %125 = vmatpush1.msra.mxu0 %v51_v9  ;;  %v102_v29 = vrot.slane %v275_v27, %v101_v23  ;;  %v33_v32 = vld [vmem:[#allocation2 + $0x20] sm:$0xff]  ;;  %v31_v34 = vld [vmem:[#allocation2 + $0x10] sm:$0xff]  ;;  %v30_v35 = vld [vmem:[#allocation2 + $0x8] sm:$0xff]  ;;  %v98_v6 = vrot.slane %v275_v27, %v97_v1 }
  0x18   :  { %126 = vmatprep.subr.mxu0 %v50_v10  ;;  %v29_v36 = vld [vmem:[#allocation2] sm:$0xff]  ;;  %v92_v37 = vld [vmem:[#allocation2 + $0x1f8] sm:$0xff]  ;;  %v91_v38 = vld [vmem:[#allocation2 + $0x1f0] sm:$0xff] }
  0x19   :  { %127 = vmatpush1.msra.mxu0 %v49_v11  ;;  %180 = vmatprep.mubr.f32.mxu0 %v102_v29  ;;  %v90_v39 = vld [vmem:[#allocation2 + $0x1e8] sm:$0xff]  ;;  %v89_v40 = vld [vmem:[#allocation2 + $0x1e0] sm:$0xff]  ;;  %v88_v41 = vld [vmem:[#allocation2 + $0x1d8] sm:$0xff] }
  0x1a   :  { %128 = vmatprep.subr.mxu0 %v48_v12  ;;  %v87_v42 = vld [vmem:[#allocation2 + $0x1d0] sm:$0xff]  ;;  %v86_v43 = vld [vmem:[#allocation2 + $0x1c8] sm:$0xff]  ;;  %v85_v44 = vld [vmem:[#allocation2 + $0x1c0] sm:$0xff]  ;;  %v192_v12 = vunpack.c.0.s8 %v191_v8 }
  0x1b   :  { %129 = vmatpush1.msra.mxu0 %v47_v14  ;;  %v84_v45 = vld [vmem:[#allocation2 + $0x1b8] sm:$0xff]  ;;  %v83_v46 = vld [vmem:[#allocation2 + $0x1b0] sm:$0xff]  ;;  %v82_v47 = vld [vmem:[#allocation2 + $0x1a8] sm:$0xff] }
  0x1c   :  { %130 = vmatprep.subr.mxu0 %v46_v15  ;;  %v81_v48 = vld [vmem:[#allocation2 + $0x1a0] sm:$0xff]  ;;  %v80_v49 = vld [vmem:[#allocation2 + $0x198] sm:$0xff]  ;;  %v79_v50 = vld [vmem:[#allocation2 + $0x190] sm:$0xff] }
  0x1d   :  { %131 = vmatpush1.msra.mxu0 %v45_v16  ;;  %v78_v51 = vld [vmem:[#allocation2 + $0x188] sm:$0xff]  ;;  %v77_v52 = vld [vmem:[#allocation2 + $0x180] sm:$0xff]  ;;  %v76_v53 = vld [vmem:[#allocation2 + $0x178] sm:$0xff] }
  0x1e   :  { %132 = vmatprep.subr.mxu0 %v44_v17  ;;  %v75_v54 = vld [vmem:[#allocation2 + $0x170] sm:$0xff]  ;;  %v74_v55 = vld [vmem:[#allocation2 + $0x168] sm:$0xff]  ;;  %v73_v56 = vld [vmem:[#allocation2 + $0x160] sm:$0xff] }
  0x1f   :  { %133 = vmatpush1.msra.mxu0 %v43_v19  ;;  %v72_v57 = vld [vmem:[#allocation2 + $0x158] sm:$0xff]  ;;  %v71_v58 = vld [vmem:[#allocation2 + $0x150] sm:$0xff]  ;;  %v70_v59 = vld [vmem:[#allocation2 + $0x148] sm:$0xff]  ;;  %v195_v19 = vsub.s32 %v192_v12, %v269_v18 }
  0x20   :  { %134 = vmatprep.subr.mxu0 %v42_v20  ;;  %v69_v60 = vld [vmem:[#allocation2 + $0x140] sm:$0xff]  ;;  %v68_v61 = vld [vmem:[#allocation2 + $0x138] sm:$0xff]  ;;  %v67_v62 = vld [vmem:[#allocation2 + $0x130] sm:$0xff] }
  0x21   :  { %135 = vmatpush1.msra.mxu0 %v41_v21  ;;  %v66_v63 = vld [vmem:[#allocation2 + $0x128] sm:$0xff]  ;;  %v65_v0 = vld [vmem:[#allocation2 + $0x120] sm:$0xff]  ;;  %v64_v2 = vld [vmem:[#allocation2 + $0x118] sm:$0xff] }
  0x22   :  { %136 = vmatprep.subr.mxu0 %v40_v22  ;;  %v63_v3 = vld [vmem:[#allocation2 + $0x110] sm:$0xff]  ;;  %v62_v4 = vld [vmem:[#allocation2 + $0x108] sm:$0xff]  ;;  %v61_v5 = vld [vmem:[#allocation2 + $0x100] sm:$0xff] }
  0x23   :  { %137 = vmatpush1.msra.mxu0 %v39_v24  ;;  %v93_v9 = vld [vmem:[%s294_s2] sm:$0x3] }
  0x24   :  { %138 = vmatprep.subr.mxu0 %v38_v25  ;;  %v109_v10 = vrot.slane %v93_v9, %v97_v1  ;;  %v113_v11 = vrot.slane %v93_v9, %v101_v23 }
  0x25   :  { %139 = vmatpush1.msra.mxu0 %v37_v26 }
  0x26   :  { %140 = vmatprep.subr.mxu0 %v36_v28 }
  0x27   :  { %141 = vmatpush1.msra.mxu0 %v35_v30 }
  0x28   :  { %142 = vmatprep.subr.mxu0 %v34_v31 }
  0x29   :  { %143 = vmatpush1.msra.mxu0 %v33_v32 }
  0x2a   :  { %144 = vmatprep.subr.mxu0 %v32_v33 }
  0x2b   :  { %145 = vmatpush1.msra.mxu0 %v31_v34 }
  0x2c   :  { %146 = vmatprep.subr.mxu0 %v30_v35 }
  0x2d   :  { %147 = vmatpush1.msra.mxu0 %v29_v36 }
  0x2e   :  { %148 = vmatprep.subr.mxu0 %v92_v37 }
  0x2f   :  { %149 = vmatpush2.msra.mxu0 %v91_v38 }
  0x30   :  { %150 = vmatprep.subr.mxu0 %v90_v39 }
  0x31   :  { %151 = vmatpush2.msra.mxu0 %v89_v40 }
  0x32   :  { %152 = vmatprep.subr.mxu0 %v88_v41 }
  0x33   :  { %153 = vmatpush2.msra.mxu0 %v87_v42 }
  0x34   :  { %154 = vmatprep.subr.mxu0 %v86_v43 }
  0x35   :  { %155 = vmatpush2.msra.mxu0 %v85_v44 }
  0x36   :  { %156 = vmatprep.subr.mxu0 %v84_v45 }
  0x37   :  { %157 = vmatpush2.msra.mxu0 %v83_v46 }
  0x38   :  { %158 = vmatprep.subr.mxu0 %v82_v47 }
  0x39   :  { %159 = vmatpush2.msra.mxu0 %v81_v48 }
  0x3a   :  { %160 = vmatprep.subr.mxu0 %v80_v49 }
  0x3b   :  { %161 = vmatpush2.msra.mxu0 %v79_v50 }
  0x3c   :  { %162 = vmatprep.subr.mxu0 %v78_v51 }
  0x3d   :  { %163 = vmatpush2.msra.mxu0 %v77_v52 }
  0x3e   :  { %164 = vmatprep.subr.mxu0 %v76_v53 }
  0x3f   :  { %165 = vmatpush2.msra.mxu0 %v75_v54 }
  0x40   :  { %166 = vmatprep.subr.mxu0 %v74_v55 }
  0x41   :  { %167 = vmatpush2.msra.mxu0 %v73_v56 }
  0x42   :  { %168 = vmatprep.subr.mxu0 %v72_v57 }
  0x43   :  { %169 = vmatpush2.msra.mxu0 %v71_v58 }
  0x44   :  { %170 = vmatprep.subr.mxu0 %v70_v59 }
  0x45   :  { %171 = vmatpush2.msra.mxu0 %v69_v60 }
  0x46   :  { %172 = vmatprep.subr.mxu0 %v68_v61 }
  0x47   :  { %173 = vmatpush2.msra.mxu0 %v67_v62 }
  0x48   :  { %174 = vmatprep.subr.mxu0 %v66_v63 }
  0x49   :  { %175 = vmatpush2.msra.mxu0 %v65_v0 }
  0x4a   :  { %176 = vmatprep.subr.mxu0 %v64_v2 }
  0x4b   :  { %177 = vmatpush2.msra.mxu0 %v63_v3 }
  0x4c   :  { %178 = vmatprep.subr.mxu0 %v62_v4 }
  0x4d   :  { %179 = vmatpush2.msra.mxu0 %v61_v5 }
  0x4e   :  { %181 = vmatmul.mubr.f32.vlgmr.msra.gmra.mxu0 %v98_v6 }
 0x10e   :  { %v182_v14 = vpop.f32.mrf.mxu0 }
 0x10f   :  { %v183_v16 = vadd.f32 %v182_v14, %v109_v10 }
 0x110   :  { %v184_v15 = vpop.f32.mrf.mxu0 }
 0x111   :  { %v185_v17 = vadd.f32 %v184_v15, %v113_v11 }
 0x113   :  { %v189_v20 = vcombine.low %v183_v16, %v185_v17 }
 0x115   :  { %v196_v21 = vrot.slane %v189_v20, %v195_v19 }
 0x117   :  { %v203_v22 = vrot.slane %v196_v21, %v195_v19 }
 0x119   :  { %209 = vst.msk [vmem:[%s295_s3] sm:$0x3] %vm207_vm0, %v203_v22 }
 0x11a   :  { %214 = vsyncpa [#allocation3], 1 }

</bundles_post_ra>
